<compile_context>
chip_gen: v5e
topology: v5e:2x2
jax: 0.10.0
libtpu: 0.0.40
codegen_flags: <defaults>
</compile_context>

<pallas_src>
import functools

import jax
import jax.numpy as jnp
from jax.experimental import pallas as pl
from jax.experimental.pallas import tpu as pltpu


# ----------------------------------------------------------------------------
# Kernel
# ----------------------------------------------------------------------------
def _binary_act_kernel(x_ref, y_ref, o_ref, *, op_name):
    x = x_ref[...]
    y = y_ref[...]
    if op_name == "min":
        out = jnp.minimum(x, y)
    elif op_name == "max":
        out = jnp.maximum(x, y)
    elif op_name == "add":
        out = x + y
    elif op_name == "sub":
        out = x - y
    elif op_name == "mul":
        out = x * y
    elif op_name == "div":
        out = x / y
    elif op_name == "pow":
        # NOTE: lowers to exp(y*log(x)) on the EUP; NaN for negative non-integer
        # bases, matching torch float-pow semantics.
        out = jnp.power(x, y)
    else:
        raise ValueError(f"unsupported act_func: {op_name}")
    o_ref[...] = out.astype(o_ref.dtype)


# ----------------------------------------------------------------------------
# Wrapper
# ----------------------------------------------------------------------------
_LANE_CANDIDATES = (8192, 4096, 2048, 1024, 512, 256, 128)
# ~2 MiB per operand tile -> 3 operands x 2 buffers = 12 MiB, fits the 16 MiB
# v5e scoped-VMEM default (v6e: 32 MiB, v7x: 32 MiB scoped / 64 MiB physical).
_TARGET_TILE_BYTES = 2 * 1024 * 1024


def pallas_binary_activation(x, y, op_name="max"):
    """Elementwise 2-arg activation via a Pallas TPU kernel (no padding copies)."""
    assert x.shape == y.shape and x.dtype == y.dtype
    orig_shape = x.shape
    n = x.size
    itemsize = jnp.dtype(x.dtype).itemsize

    # Pick the widest lane-dense column count that exactly divides the element
    # count -> pure reshape (no HBM copy), wide unmasked vector stores.
    cols = next((c for c in _LANE_CANDIDATES if n % c == 0), None)

    if cols is None:
        # Element count not a multiple of 128: run the whole tensor as one
        # full-extent block (full-extent blocks bypass the (8,128) tile rule).
        # Fine for test-scale inputs.
        # TODO(synk): masked-tail multi-step path for huge non-128-multiple sizes.
        cols = n
        rows = 1
        row_tile = 1
    else:
        rows = n // cols
        max_row_tile = max(8, (_TARGET_TILE_BYTES // (cols * itemsize)) // 8 * 8)
        # Small inputs: single full-extent block.  Large inputs: multiple-of-8
        # row tiles; a non-dividing boundary block is handled by Pallas
        # (OOB reads are garbage in discarded lanes, OOB writes are dropped),
        # which is safe for a pure elementwise op.
        row_tile = rows if rows <= max_row_tile else max_row_tile

    xf = x.reshape(rows, cols)  # views of the flat buffer, no copies
    yf = y.reshape(rows, cols)

    grid = (pl.cdiv(rows, row_tile),)
    kernel = functools.partial(_binary_act_kernel, op_name=op_name)

    tile_bytes = row_tile * cols * itemsize
    vmem_needed = 3 * 2 * tile_bytes + (1 << 20)  # 3 operands, double-buffered
    compiler_kwargs = dict(dimension_semantics=("parallel",))
    if vmem_needed > (16 << 20):
        # Only needed for the rare single-huge-block fallback path.
        compiler_kwargs["vmem_limit_bytes"] = min(vmem_needed, 64 << 20)

    out = pl.pallas_call(
        kernel,
        out_shape=jax.ShapeDtypeStruct((rows, cols), x.dtype),
        grid=grid,
        in_specs=[
            pl.BlockSpec((row_tile, cols), lambda i: (i, 0)),
            pl.BlockSpec((row_tile, cols), lambda i: (i, 0)),
        ],
        out_specs=pl.BlockSpec((row_tile, cols), lambda i: (i, 0)),
        compiler_params=pltpu.CompilerParams(**compiler_kwargs),
    )(xf, yf)

    return out.reshape(orig_shape)


# ----------------------------------------------------------------------------
# Driver
# ----------------------------------------------------------------------------
if __name__ == "__main__":
    key = jax.random.PRNGKey(0)
    kx, ky = jax.random.split(key)

    # Small NCHW inputs, consistent with the 2-arg elementwise forward.
    shape = (2, 4, 16, 16)
    x = jax.random.normal(kx, shape, dtype=jnp.float32)
    y = jax.random.normal(ky, shape, dtype=jnp.float32)

    checks = {
        "min": jnp.minimum,
        "max": jnp.maximum,
        "add": lambda a, b: a + b,
        "sub": lambda a, b: a - b,
        "mul": lambda a, b: a * b,
        "div": lambda a, b: a / b,
    }

    ok = True
    for name, ref_fn in checks.items():
        got = jax.block_until_ready(pallas_binary_activation(x, y, name))
        want = ref_fn(x, y)
        if not jnp.allclose(got, want, rtol=1e-6, atol=1e-6):
            ok = False
            print(f"MISMATCH for op {name}")

    # pow with a positive base (matches the test's usage).
    x_pos = jnp.abs(x) + 0.5
    got = jax.block_until_ready(pallas_binary_activation(x_pos, y, "pow"))
    want = jnp.power(x_pos, y)
    if not jnp.allclose(got, want, rtol=1e-5, atol=1e-5):
        ok = False
        print("MISMATCH for op pow")

    if ok:
        print("KERNEL_OK")
</pallas_src>

<mosaic_0001>
module attributes {stable_mosaic.version = 11 : i64} {
  func.func @_binary_act_kernel(%arg0: i32, %arg1: memref<1x2048xf32, #tpu.memory_space<vmem>>, %arg2: memref<1x2048xf32, #tpu.memory_space<vmem>>, %arg3: memref<1x2048xf32, #tpu.memory_space<vmem>>) attributes {dimension_semantics = [#tpu.dimension_semantics<parallel>], iteration_bounds = array<i64: 1>, scalar_prefetch = 0 : i64, scratch_operands = 0 : i64, tpu.core_type = #tpu.core_type<tc>, window_params = [{transform_indices = @transform_0, window_bounds = array<i64: 1, 2048>}, {transform_indices = @transform_1, window_bounds = array<i64: 1, 2048>}, {transform_indices = @transform_2, window_bounds = array<i64: 1, 2048>}]} {
    %c0 = arith.constant 0 : index
    %c0_0 = arith.constant 0 : index
    %0 = vector.load %arg1[%c0, %c0_0] : memref<1x2048xf32, #tpu.memory_space<vmem>>, vector<1x2048xf32>
    %c0_1 = arith.constant 0 : index
    %c0_2 = arith.constant 0 : index
    %1 = vector.load %arg2[%c0_1, %c0_2] : memref<1x2048xf32, #tpu.memory_space<vmem>>, vector<1x2048xf32>
    %2 = arith.minimumf %0, %1 : vector<1x2048xf32>
    %c0_3 = arith.constant 0 : index
    %c0_4 = arith.constant 0 : index
    %3 = vector.load %arg3[%c0_3, %c0_4] : memref<1x2048xf32, #tpu.memory_space<vmem>>, vector<1x2048xf32>
    tpu.vector_store %arg3[%c0_3, %c0_4], %2 {strides = array<i32>} : memref<1x2048xf32, #tpu.memory_space<vmem>>, vector<1x2048xf32>,
    return
  }
  func.func @transform_0(%arg0: i32) -> (i32, i32) {
    %c0_i32 = arith.constant 0 : i32
    %c0_i32_0 = arith.constant 0 : i32
    return %arg0, %c0_i32 : i32, i32
  }
  func.func @transform_1(%arg0: i32) -> (i32, i32) {
    %c0_i32 = arith.constant 0 : i32
    %c0_i32_0 = arith.constant 0 : i32
    return %arg0, %c0_i32 : i32, i32
  }
  func.func @transform_2(%arg0: i32) -> (i32, i32) {
    %c0_i32 = arith.constant 0 : i32
    %c0_i32_0 = arith.constant 0 : i32
    return %arg0, %c0_i32 : i32, i32
  }
}

</mosaic_0001>

<bundles_post_ra>
// kernel: tpu_custom_call.1
= control target key start
LH: loop header
LB: loop body
LE: loop exit
PB: predicated region body
PF: predicated region fallthrough
CT: control target
= control target key end

     0   :  { %7 = vsyncpa [#allocation3], 0  ;;  %s174_s0 = inlined_call_operand.hbm [shape: f32[1,2048], index: 0, kind: input, shape index: {}]   ;;  %s175_s1 = inlined_call_operand.hbm [shape: f32[1,2048], index: 1, kind: input, shape index: {}]   ;;  %s176_s2 = inlined_call_operand.hbm [shape: f32[1,2048], index: 2, kind: output, shape index: {}]  }
   0x1   :  { %8 = vsyncpa [#allocation6], 0 }
   0x2   :  { %9 = vsyncpa [#allocation4], 0  ;;  %s15_s11 = sshll.u32 %s174_s0, 4  ;;  %s147_s12 = smov [#allocation2]   ;;  %s16_s11 = int_to_ptr.hbm [resolvable:$true] %s15_s11 }
   0x3   :  { %s17_s13 = sshll.u32 %s147_s12, 4  ;;  %s26_s16 = sshll.u32 %s175_s1, 4  ;;  %s18_s13 = int_to_ptr.vmem [resolvable:$true] %s17_s13  ;;  %s27_s16 = int_to_ptr.hbm [resolvable:$true] %s26_s16 }
   0x4   :  { %20 = dma.hbm_to_vmem [thread:$0]  %s16_s11, 256, %s18_s13, [#allocation3]  }
   0x5   :  { %s148_s17 = smov [#allocation5]  }
   0x6   :  { %s28_s18 = sshll.u32 %s148_s17, 4  ;;  %s29_s18 = int_to_ptr.vmem [resolvable:$true] %s28_s18 }
   0x7   :  { %31 = dma.hbm_to_vmem [thread:$0]  %s27_s16, 256, %s29_s18, [#allocation6]  }
   0x8   :  { %141 = dma.done.wait [#allocation3], 256  }
   0x9   :  { %142 = vsyncadd [#allocation3], 4294967040 }
   0xa   :  { %143 = dma.done.wait [#allocation6], 256  }
   0xb   :  { %144 = vsyncadd [#allocation6], 4294967040  ;;  %s149_s19 = smov [#allocation7]   ;;  %s55_s22 = sshll.u32 %s176_s2, 4  ;;  %v40_v0 = vld [vmem:[#allocation2] sm:$0xff]  ;;  %v42_v1 = vld [vmem:[#allocation5] sm:$0xff]  ;;  %s56_s22 = int_to_ptr.hbm [resolvable:$true] %s55_s22 }
   0xc   :  { %s53_s0 = sshll.u32 %s149_s19, 4  ;;  %v41_v2 = vld [vmem:[#allocation2 + $0x8] sm:$0xff]  ;;  %v44_v3 = vmin.f32 %v40_v0, %v42_v1  ;;  %v43_v4 = vld [vmem:[#allocation5 + $0x8] sm:$0xff]  ;;  %s54_s0 = int_to_ptr.vmem [resolvable:$true] %s53_s0 }
   0xd   :  { %v45_v5 = vmin.f32 %v41_v2, %v43_v4 }
   0xe   :  { %46 = vst [vmem:[#allocation7] sm:$0xff] %v44_v3 }
   0xf   :  { %47 = vst [vmem:[#allocation7 + $0x8] sm:$0xff] %v45_v5 }
  0x10   :  { %58 = dma.vmem_to_hbm [thread:$0]  %s54_s0, 256, %s56_s22, [#allocation4]  }
  0x11   :  { %145 = dma.done.wait [#allocation4], 256  }
  0x12   :  { %146 = vsyncadd [#allocation4], 4294967040 }
  0x13   :  { %63 = vsyncpa [#allocation3], 1 }
  0x14   :  { %64 = vsyncpa [#allocation6], 1 }
  0x15   :  { %65 = vsyncpa [#allocation4], 1 }

</bundles_post_ra>
